<compile_context>
chip_gen: v7x
topology: tpu7x:2x2x1
jax: 0.10.0
libtpu: 0.0.40
codegen_flags: <defaults>
</compile_context>

<pallas_src>
import jax
import jax.numpy as jnp
from jax.experimental import pallas as pl
from jax.experimental.pallas import tpu as pltpu


def _make_posenc_kernel(Ct, Bt):
    """Kernel over flattened (B, S*E) output blocks of shape (Bt, Ct)."""

    def kernel(lens_ref, w_ref, o_ref):
        # lens_ref : (B_pad, 1) resident  OR  (Bt, 1) per-block; values = len*E
        # w_ref    : (1, Ct)   table rows 1..S flattened (lane-dense)
        # o_ref    : (Bt, Ct)
        if lens_ref.shape[0] == Bt:
            lim = lens_ref[...]                                   # (Bt, 1)
        else:
            b = pl.program_id(1)
            r0 = pl.multiple_of(b * Bt, Bt)
            lim = lens_ref[pl.ds(r0, Bt), :]                      # (Bt, 1)
        # Global flattened column index of this block (no pos array, no divide:
        # col < len*E  <=>  (col // E) < len  because positions are contiguous).
        col = jax.lax.broadcasted_iota(jnp.int32, (1, Ct), 1) + pl.program_id(0) * Ct
        zero = jnp.zeros((), dtype=w_ref.dtype)                   # typed fill
        o_ref[...] = jnp.where(col < lim, w_ref[...], zero).astype(o_ref.dtype)

    return kernel


def make_sinusoid_table(max_len, emb_dims, dtype=jnp.float32):
    """Same construction as the PyTorch __init__ (train=False, pad=True)."""
    pos = jnp.arange(max_len, dtype=jnp.float32)[:, None]
    j = jnp.arange(emb_dims, dtype=jnp.float32)[None, :]
    angle = pos / jnp.power(10000.0, 2.0 * jnp.floor(j / 2.0) / emb_dims)
    even = (jnp.arange(emb_dims) % 2) == 0
    pc = jnp.where(even[None, :], jnp.sin(angle), jnp.cos(angle))
    pad_row = jnp.zeros((1, emb_dims), jnp.float32)
    return jnp.concatenate([pad_row, pc], axis=0).astype(dtype)  # (max_len+1, E)


def pos_enc_forward(x, table):
    """x: [B, S] or [B, S, D]; table: [S+1, E] with row 0 = zero pad row."""
    # --- length computation hoisted out of the kernel (tiny XLA reduction) ---
    if x.ndim == 2:
        lens = jnp.sum((jnp.abs(x) > 0).astype(jnp.int32), axis=1)
    elif x.ndim == 3:
        lens = jnp.sum((jnp.sum(jnp.abs(x), axis=2) > 0).astype(jnp.int32), axis=1)
    else:
        raise ValueError("x must be [B, S] or [B, S, D]")

    B, S = x.shape[0], x.shape[1]
    E = table.shape[1]
    assert table.shape[0] == S + 1, "x.shape[1] must equal max_len"
    dtype = table.dtype
    itemsize = jnp.dtype(dtype).itemsize
    SE = S * E

    # Flattened, lane-dense table rows 1..S.
    w = table[1:, :].reshape(1, SE)

    # ---------------- tile sizing (target ~4 MiB output tiles) ----------------
    TILE_BYTES = 4 * 1024 * 1024
    sublane = {4: 8, 2: 16, 1: 32}.get(itemsize, 8)      # dtype sublane packing
    min_rows = min(B, sublane)
    # Column budget per row so that even at the minimum row count the output
    # tile stays ~TILE_BYTES (and never above 2 MiB per row).
    col_cap = max(128, min((2 * 1024 * 1024) // itemsize,
                           TILE_BYTES // max(1, min_rows * itemsize)))

    if SE <= col_cap:
        Ct = SE                                           # full flattened row
    else:
        top = (col_cap // 128) * 128
        Ct = top                                          # ragged last block is masked
        if SE % 128 == 0:
            # Prefer an exact 128-multiple divisor (fully unmasked stores),
            # but only if it stays within 2x of the budget.
            for cand in range(top, max(top // 2, 127), -128):
                if SE % cand == 0:
                    Ct = cand
                    break
    nc = pl.cdiv(SE, Ct)

    target_rows = max(1, TILE_BYTES // (Ct * itemsize))
    if target_rows >= B:
        Bt = B
    else:
        Bt = max(sublane, (target_rows // sublane) * sublane)
    nb = pl.cdiv(B, Bt)
    B_pad = nb * Bt

    # Per-row flat-index limit: col < lens*E  <=>  position < lens.
    lens_flat = (lens.astype(jnp.int32) * E).reshape(B, 1)
    if B_pad != B:
        # Only the tiny lens vector is padded; the OUTPUT is not padded
        # (Pallas masks the ragged last batch block), so no post-kernel slice.
        lens_flat = jnp.pad(lens_flat, ((0, B_pad - B), (0, 0)))

    # lens fully VMEM-resident (single DMA) when its lane-padded footprint is small.
    lens_rows_padded = -(-B_pad // 8) * 8
    lens_vmem_bytes = lens_rows_padded * 128 * 4 * 2
    resident_lens = lens_vmem_bytes <= (2 * 1024 * 1024)

    if resident_lens:
        lens_spec = pl.BlockSpec((B_pad, 1), lambda c, b: (0, 0))
        lens_need = lens_vmem_bytes
    else:
        lens_spec = pl.BlockSpec((Bt, 1), lambda c, b: (b, 0))
        lens_need = (-(-Bt // 8) * 8) * 128 * 4 * 2

    out_tile_bytes = Bt * Ct * itemsize
    w_tile_bytes = Ct * itemsize
    need = 2 * (out_tile_bytes + w_tile_bytes) + lens_need   # double-buffered
    vmem_limit = int(min(max(need + (4 << 20), 16 << 20), 48 << 20))

    # Grid order: batch (nb) is the fastest axis so the w column block stays
    # resident in VMEM across the whole batch sweep (fetched once per c block).
    # Both axes are parallel; when nc == 1 (common), Mosaic core-shards nb on
    # v7x's two TensorCores.
    out_flat = pl.pallas_call(
        _make_posenc_kernel(Ct, Bt),
        out_shape=jax.ShapeDtypeStruct((B, SE), dtype),
        grid=(nc, nb),
        in_specs=[
            lens_spec,
            pl.BlockSpec((1, Ct), lambda c, b: (0, c)),   # flattened table rows
        ],
        out_specs=pl.BlockSpec((Bt, Ct), lambda c, b: (b, c)),
        compiler_params=pltpu.CompilerParams(
            dimension_semantics=("parallel", "parallel"),
            vmem_limit_bytes=vmem_limit),
    )(lens_flat, w)

    return out_flat.reshape(B, S, E)


if __name__ == "__main__":
    key = jax.random.PRNGKey(0)
    B, S, E = 2, 8, 32          # batch, max_len, emb_dims
    D = E

    # Padded token-feature batch: batch 0 has 5 valid positions, batch 1 has 8.
    x = jax.random.normal(key, (B, S, D), dtype=jnp.float32)
    lens = jnp.array([5, 8], dtype=jnp.int32)
    t = jnp.arange(S)[None, :]
    valid = t < lens[:, None]
    x = jnp.where(valid[:, :, None], x, 0.0)

    table = make_sinusoid_table(S, E)

    # Pure-JAX reference: exact embedding-lookup semantics of the PyTorch module.
    pos_idx = jnp.where(valid, t + 1, 0)        # [B, S], 0 = pad index
    ref = table[pos_idx]                         # [B, S, E]

    # 3-D feature input path.
    out = jax.block_until_ready(pos_enc_forward(x, table))
    assert out.shape == (B, S, E)
    assert jnp.allclose(out, ref, atol=1e-6), "mismatch vs reference (3-D x)"

    # 2-D token-id input path.
    x2 = jnp.where(valid, jnp.arange(1, S + 1)[None, :], 0).astype(jnp.int32)
    out2 = jax.block_until_ready(pos_enc_forward(x2, table))
    assert jnp.allclose(out2, ref, atol=1e-6), "mismatch vs reference (2-D x)"

    print("KERNEL_OK")
</pallas_src>

<mosaic_0001>
module attributes {stable_mosaic.version = 11 : i64} {
  func.func @kernel(%arg0: i32, %arg1: i32, %arg2: memref<2x1xi32, #tpu.memory_space<vmem>>, %arg3: memref<1x256xf32, #tpu.memory_space<vmem>>, %arg4: memref<2x256xf32, #tpu.memory_space<vmem>>) attributes {dimension_semantics = [#tpu.dimension_semantics<parallel>, #tpu.dimension_semantics<parallel>], iteration_bounds = array<i64: 1, 1>, scalar_prefetch = 0 : i64, scratch_operands = 0 : i64, tpu.core_type = #tpu.core_type<tc>, window_params = [{pipeline_mode = #tpu.pipeline_mode<synchronous>, transform_indices = @transform_0, window_bounds = array<i64: 2, 1>}, {transform_indices = @transform_1, window_bounds = array<i64: 1, 256>}, {transform_indices = @transform_2, window_bounds = array<i64: 2, 256>}]} {
    %c0 = arith.constant 0 : index
    %c0_0 = arith.constant 0 : index
    %0 = vector.load %arg2[%c0, %c0_0] : memref<2x1xi32, #tpu.memory_space<vmem>>, vector<2x1xi32>
    %1 = tpu.iota {dimensions = array<i32: 1>} : vector<1x256xi32>
    %c256_i32 = arith.constant 256 : i32
    %2 = arith.muli %arg0, %c256_i32 : i32
    %3 = vector.broadcast %2 : i32 to vector<1x256xi32>
    %4 = arith.addi %1, %3 : vector<1x256xi32>
    %5 = vector.broadcast %4 : vector<1x256xi32> to vector<2x256xi32>
    %6 = vector.broadcast %0 : vector<2x1xi32> to vector<2x256xi32>
    %7 = arith.cmpi slt, %5, %6 : vector<2x256xi32>
    %c0_1 = arith.constant 0 : index
    %c0_2 = arith.constant 0 : index
    %8 = vector.load %arg3[%c0_1, %c0_2] : memref<1x256xf32, #tpu.memory_space<vmem>>, vector<1x256xf32>
    %cst = arith.constant 0.000000e+00 : f32
    %9 = vector.shape_cast %8 : vector<1x256xf32> to vector<1x256xf32>
    %10 = vector.broadcast %9 : vector<1x256xf32> to vector<2x256xf32>
    %11 = vector.broadcast %cst : f32 to vector<2x256xf32>
    %12 = arith.select %7, %10, %11 : vector<2x256xi1>, vector<2x256xf32>
    %c0_3 = arith.constant 0 : index
    %c0_4 = arith.constant 0 : index
    %13 = vector.load %arg4[%c0_3, %c0_4] : memref<2x256xf32, #tpu.memory_space<vmem>>, vector<2x256xf32>
    tpu.vector_store %arg4[%c0_3, %c0_4], %12 {strides = array<i32>} : memref<2x256xf32, #tpu.memory_space<vmem>>, vector<2x256xf32>,
    return
  }
  func.func @transform_0(%arg0: i32, %arg1: i32) -> (i32, i32) {
    %c0_i32 = arith.constant 0 : i32
    %c0_i32_0 = arith.constant 0 : i32
    %c0_i32_1 = arith.constant 0 : i32
    return %c0_i32, %c0_i32_0 : i32, i32
  }
  func.func @transform_1(%arg0: i32, %arg1: i32) -> (i32, i32) {
    %c0_i32 = arith.constant 0 : i32
    %c0_i32_0 = arith.constant 0 : i32
    return %c0_i32, %arg0 : i32, i32
  }
  func.func @transform_2(%arg0: i32, %arg1: i32) -> (i32, i32) {
    %c0_i32 = arith.constant 0 : i32
    return %arg1, %arg0 : i32, i32
  }
}

</mosaic_0001>

<bundles_post_ra>
// kernel: tpu_custom_call.1
= control target key start
LH: loop header
LB: loop body
LE: loop exit
PB: predicated region body
PF: predicated region fallthrough
CT: control target
= control target key end

     0   :  { %v93_v1 = vmov 0   ;;  %s128_s0 = inlined_call_operand.vmem [shape: s32[2,1], index: 0, kind: input, shape index: {}]   ;;  %s129_s1 = inlined_call_operand.vmem [shape: f32[1,256], index: 1, kind: input, shape index: {}]   ;;  %s130_s2 = inlined_call_operand.hbm [shape: f32[2,256], index: 2, kind: output, shape index: {}]  }
   0x1   :  { %v12_v0 = vld [vmem:[%s128_s0] sm:$0x3]  ;;  %68 = vset.pattern.permute.xlu0 %v93_v1 }
   0x2   :  { %7 = vsyncpa [#allocation3], 0  ;;  %21 = vperm.xlu0 %68, %v12_v0   ;;  %v13_v2 = vlaneseq  ;;  %v25_v7 = vld [vmem:[%s129_s1] sm:$0x3]  ;;  %s94_s13 = smov [#allocation2]  }
   0x3   :  { %s57_s14 = sshll.u32 %s94_s13, 4  ;;  %s58_s14 = int_to_ptr.vmem [resolvable:$true] %s57_s14 }
   0x4   :  { %v28_v3 = vshrl.u32 %v13_v2, 7  ;;  %v14_v4 = vand.u32 127, %v13_v2  ;;  %s69_s0 = scalar_lea.vmem %s58_s14, 64  ;;  %p74_p1 = scmp.lt.s32.totalorder %s58_s14, %s58_s14 }
   0x5   :  { %p70_p0 = scmp.ne.s32.totalorder %s58_s14, %s69_s0  ;;  %p75_p2 = scmp.lt.s32.totalorder %s69_s0, %s69_s0 }
   0x6   :  { %v29_v5 = vsub.s32 0, %v28_v3  ;;  %v33_v6 = vsub.s32 1, %v28_v3  ;;  %v15_v8 = vadd.s32 128, %v14_v4 }
   0x7   :  { %p76_p3 = por %p75_p2, %p74_p1 }
   0x8   :  { %v30_v9 = vrot.slane %v25_v7, %v29_v5  ;;  %v34_v10 = vrot.slane %v25_v7, %v33_v6 }
   0x9   :  { %p77_p4 = pnand %p76_p3, %p70_p0 }
  0x81   :  { %v22_v11 = vpop.permute.xlu0 %21 }
  0x82   :  { %vm23_vm0 = vcmp.lt.s32.totalorder %v14_v4, %v22_v11  ;;  %vm24_vm1 = vcmp.lt.s32.totalorder %v15_v8, %v22_v11 }
  0x83   :  { %v37_v12 = vsel %vm23_vm0, %v30_v9, 0.0  ;;  %v38_v13 = vsel %vm24_vm1, %v34_v10, 0.0 }
  0x84   :  { %v41_v14 = vcombine.low %v37_v12, %v38_v13 }
  0x86   :  { %65 = vst.sshfl [vmem:[#allocation2] sm:$0x33 pattern:$0x76325410] %v41_v14 }
  0x87   :  { %80 = shalt.err (!%p77_p4)
}
  0x88   :  { %s81_s16 = scalar_lea.hbm %s130_s2, 64 }
  0x89   :  { %p82_p5 = scmp.ne.s32.totalorder %s130_s2, %s81_s16  ;;  %p85_p6 = scmp.lt.u32.totalorder %s81_s16, %s130_s2 }
  0x8b   :  { %p87_p7 = pnand %p85_p6, %p82_p5 }
  0x8d   :  { %90 = shalt.err (!%p87_p7)
}
  0x8e   :  { %60 = dma.vmem_to_hbm [thread:$0]  %s58_s14, 64, %s130_s2, [#allocation3]  }
  0x8f   :  { %91 = dma.done.wait [#allocation3], 64  }
  0x90   :  { %92 = vsyncadd [#allocation3], 4294967232 }
  0x91   :  { %64 = vsyncpa [#allocation3], 1 }

</bundles_post_ra>
